<compile_context>
chip_gen: v5e
topology: v5e:2x2
jax: 0.10.0
libtpu: 0.0.40
codegen_flags: <defaults>
</compile_context>

<pallas_src>
import functools

import jax
import jax.numpy as jnp
import numpy as np
from jax.experimental import pallas as pl
from jax.experimental.pallas import tpu as pltpu


def _round_up(v, m):
    return (v + m - 1) // m * m


def _est_vmem_bytes(tb, tf, n_fft, in_bytes):
    """Rough double-buffered VMEM footprint of one grid step."""
    x_tile = tb * n_fft * in_bytes
    w_tile = n_fft * 2 * tf * in_bytes       # fused [cos | sin] slab
    o_tile = tb * tf * 4                     # f32 output tile
    return 2 * (x_tile + w_tile + o_tile)    # x2 for double buffering


def _fft_embedding_kernel(x_ref, basis_ref, out_ref):
    """x_ref: (TB, n_fft); basis_ref: (n_fft, 2*TF) = [cos | sin]; out_ref: (TB, TF)."""
    # Single fused MXU pass: (TB, n_fft) @ (n_fft, 2*TF) -> f32 (TB, 2*TF).
    acc = jnp.dot(x_ref[...], basis_ref[...], preferred_element_type=jnp.float32)
    tf = out_ref.shape[-1]
    re = acc[:, :tf]          # slice at a 128-multiple lane boundary (no relayout)
    im = acc[:, tf:]
    out_ref[...] = jnp.sqrt(re * re + im * im)


@functools.partial(
    jax.jit, static_argnames=("n_fft", "d_model", "norm", "compute_dtype")
)
def fft_embedding(x, n_fft, d_model=1, norm="forward", compute_dtype=jnp.bfloat16):
    """Pallas implementation of FFTEmbedding.forward.

    x: (batch, time) float array.  Returns (batch, n_fft//2 + 1, d_model) float32.
    """
    x = jnp.asarray(x, dtype=jnp.float32)
    B, L = x.shape

    # torch.fft.rfft(n=n_fft): zero-pad or crop the time axis to n_fft.
    if L < n_fft:
        x = jnp.pad(x, ((0, 0), (0, n_fft - L)))
    elif L > n_fft:
        x = x[:, :n_fft]

    F = n_fft // 2 + 1
    F_pad = _round_up(F, 128)                # lane-dense, unmasked stores
    scale = {"forward": 1.0 / n_fft,
             "backward": 1.0,
             "ortho": 1.0 / np.sqrt(n_fft)}[norm]

    # ---- tile selection (VMEM-budgeted, works across v5e/v6e/v7x) ----------
    in_bytes = jnp.dtype(compute_dtype).itemsize
    TB = min(_round_up(B, 8), 128)           # sublane-aligned batch tile
    TF = min(F_pad, 512)                     # lane tile, multiple of 128
    while F_pad % TF:
        TF -= 128
    budget = 40 * 1024 * 1024                # leave headroom inside 48 MiB limit
    while _est_vmem_bytes(TB, TF, n_fft, in_bytes) > budget and TF > 128:
        TF -= 128
        while F_pad % TF:
            TF -= 128
    while _est_vmem_bytes(TB, TF, n_fft, in_bytes) > budget and TB > 8:
        TB = max(8, TB // 2)
    B_pad = _round_up(B, TB)
    num_ft = F_pad // TF

    # ---- deterministic real-DFT basis, fused per F-tile as [cos | sin] -----
    n = np.arange(n_fft, dtype=np.float64)[:, None]
    k = np.arange(F, dtype=np.float64)[None, :]
    ang = 2.0 * np.pi * n * k / n_fft
    cos_pad = np.zeros((n_fft, F_pad), dtype=np.float64)
    sin_pad = np.zeros((n_fft, F_pad), dtype=np.float64)
    cos_pad[:, :F] = np.cos(ang) * scale
    sin_pad[:, :F] = -np.sin(ang) * scale
    basis = np.stack(
        [cos_pad.reshape(n_fft, num_ft, TF), sin_pad.reshape(n_fft, num_ft, TF)],
        axis=2,
    ).reshape(n_fft, num_ft * 2 * TF)
    basis = jnp.asarray(basis, dtype=compute_dtype)

    # Pad batch to the tile size; padded rows are zero -> zero magnitudes.
    if B_pad > B:
        x = jnp.pad(x, ((0, B_pad - B), (0, 0)))
    x = x.astype(compute_dtype)

    grid = (B_pad // TB, F_pad // TF)
    out_pad = pl.pallas_call(
        _fft_embedding_kernel,
        out_shape=jax.ShapeDtypeStruct((B_pad, F_pad), jnp.float32),
        grid=grid,
        in_specs=[
            pl.BlockSpec((TB, n_fft), lambda i, j: (i, 0)),       # x tile
            pl.BlockSpec((n_fft, 2 * TF), lambda i, j: (0, j)),   # [cos|sin] slab
        ],
        out_specs=pl.BlockSpec((TB, TF), lambda i, j: (i, j)),
        compiler_params=pltpu.CompilerParams(
            dimension_semantics=("parallel", "arbitrary"),
            vmem_limit_bytes=48 * 1024 * 1024,
        ),
    )(x, basis)

    # Slice off padding; tile/reshape outside the kernel (exactly matches
    # torch.tile(dims=(d_model,)) followed by torch.reshape).
    mag = out_pad[:B, :F]
    return jnp.tile(mag, (1, d_model)).reshape(B, F, d_model)


if __name__ == "__main__":
    key = jax.random.PRNGKey(0)
    batch, seq, n_fft, d_model = 4, 32, 32, 4
    x = jax.random.normal(key, (batch, seq), dtype=jnp.float32)

    # Reference (pure JAX, mirrors the torch semantics exactly).
    F = n_fft // 2 + 1
    ref_mag = jnp.abs(jnp.fft.rfft(x, n=n_fft, norm="forward"))
    ref = jnp.tile(ref_mag, (1, d_model)).reshape(batch, F, d_model)

    # f32 path: exactness check.
    out_f32 = jax.block_until_ready(
        fft_embedding(x, n_fft=n_fft, d_model=d_model, norm="forward",
                      compute_dtype=jnp.float32))
    assert out_f32.shape == (batch, F, d_model), out_f32.shape
    np.testing.assert_allclose(np.asarray(out_f32), np.asarray(ref),
                               rtol=1e-3, atol=1e-5)

    # bf16 basis path (default / performance config): looser tolerance.
    out_bf16 = jax.block_until_ready(
        fft_embedding(x, n_fft=n_fft, d_model=d_model, norm="forward"))
    assert out_bf16.shape == (batch, F, d_model), out_bf16.shape
    np.testing.assert_allclose(np.asarray(out_bf16), np.asarray(ref),
                               rtol=2e-2, atol=5e-3)

    print("KERNEL_OK")
</pallas_src>

<mosaic_0001>
module attributes {stable_mosaic.version = 11 : i64} {
  func.func @_fft_embedding_kernel(%arg0: i32, %arg1: i32, %arg2: memref<8x32xf32, #tpu.memory_space<vmem>>, %arg3: memref<32x256xf32, #tpu.memory_space<vmem>>, %arg4: memref<8x128xf32, #tpu.memory_space<vmem>>) attributes {dimension_semantics = [#tpu.dimension_semantics<parallel>, #tpu.dimension_semantics<arbitrary>], iteration_bounds = array<i64: 1, 1>, scalar_prefetch = 0 : i64, scratch_operands = 0 : i64, tpu.core_type = #tpu.core_type<tc>, window_params = [{transform_indices = @transform_0, window_bounds = array<i64: 8, 32>}, {transform_indices = @transform_1, window_bounds = array<i64: 32, 256>}, {transform_indices = @transform_2, window_bounds = array<i64: 8, 128>}]} {
    %c0 = arith.constant 0 : index
    %c0_0 = arith.constant 0 : index
    %0 = vector.load %arg2[%c0, %c0_0] : memref<8x32xf32, #tpu.memory_space<vmem>>, vector<8x32xf32>
    %c0_1 = arith.constant 0 : index
    %c0_2 = arith.constant 0 : index
    %1 = vector.load %arg3[%c0_1, %c0_2] : memref<32x256xf32, #tpu.memory_space<vmem>>, vector<32x256xf32>
    %cst = arith.constant dense<0.000000e+00> : vector<8x256xf32>
    %2 = tpu.matmul %0, %1, %cst {dimension_numbers = #tpu.dot_dimension_numbers<[1], [0], [0], [1], [0, 0, 1, 1], [], []>} : vector<8x32xf32>, vector<32x256xf32>, vector<8x256xf32> -> vector<8x256xf32>
    %3 = vector.extract_strided_slice %2 {offsets = [0, 0], sizes = [8, 128], strides = [1, 1]} : vector<8x256xf32> to vector<8x128xf32>
    %4 = vector.extract_strided_slice %2 {offsets = [0, 128], sizes = [8, 128], strides = [1, 1]} : vector<8x256xf32> to vector<8x128xf32>
    %5 = arith.mulf %3, %3 : vector<8x128xf32>
    %6 = arith.mulf %4, %4 : vector<8x128xf32>
    %7 = arith.addf %5, %6 : vector<8x128xf32>
    %8 = math.sqrt %7 : vector<8x128xf32>
    %c0_3 = arith.constant 0 : index
    %c0_4 = arith.constant 0 : index
    %9 = vector.load %arg4[%c0_3, %c0_4] : memref<8x128xf32, #tpu.memory_space<vmem>>, vector<8x128xf32>
    tpu.vector_store %arg4[%c0_3, %c0_4], %8 {strides = array<i32>} : memref<8x128xf32, #tpu.memory_space<vmem>>, vector<8x128xf32>,
    return
  }
  func.func @transform_0(%arg0: i32, %arg1: i32) -> (i32, i32) {
    %c0_i32 = arith.constant 0 : i32
    %c0_i32_0 = arith.constant 0 : i32
    return %arg0, %c0_i32 : i32, i32
  }
  func.func @transform_1(%arg0: i32, %arg1: i32) -> (i32, i32) {
    %c0_i32 = arith.constant 0 : i32
    %c0_i32_0 = arith.constant 0 : i32
    return %c0_i32, %arg1 : i32, i32
  }
  func.func @transform_2(%arg0: i32, %arg1: i32) -> (i32, i32) {
    %c0_i32 = arith.constant 0 : i32
    return %arg0, %arg1 : i32, i32
  }
}

</mosaic_0001>

<bundles_post_ra>
// kernel: tile.9
= control target key start
LH: loop header
LB: loop body
LE: loop exit
PB: predicated region body
PF: predicated region fallthrough
CT: control target
= control target key end

     0   :  { %s25_s14 = smov 12  ;;  %s52_s15 = smov 3  ;;  %vm27_vm0 = vcmask 1043458   ;;  %vm202_vm1 = vcmask 1043459   ;;  %vm19_vm2 = vcmask 31744   ;;  %vm250_vm3 = vcmask 7168   ;;  %s563_s0 = inlined_call_operand.vmem [shape: f32[4,4,17], index: 0, kind: input, shape index: {}]   ;;  %s564_s1 = inlined_call_operand.vmem [shape: f32[4,17,4], index: 1, kind: output, shape index: {}]  }
   0x1   :  { %v300_v0 = vld [vmem:[%s563_s0 + $0xc] sm:$0xf]  ;;  %v301_v1 = vld [vmem:[%s563_s0 + $0x8] sm:$0xf]  ;;  %v302_v2 = vld [vmem:[%s563_s0 + $0x4] sm:$0xf] }
   0x2   :  { %7 = vst [vmem:[#allocation0 + $0x18] sm:$0xf] %v300_v0  ;;  %v16_v3 = vld [vmem:[%s563_s0] sm:$0xf]  ;;  %s22_s0 = smov 3  ;;  %s55_s16 = smov 12 }
   0x3   :  { %11 = vst [vmem:[#allocation0 + $0x10] sm:$0xf] %v301_v1  ;;  %s37_s17 = smov 3  ;;  %s40_s18 = smov 12  ;;  %vm221_vm4 = vcmask 23552   ;;  %vm236_vm5 = vcmask 15360  }
   0x4   :  { %15 = vst [vmem:[#allocation0 + $0x8] sm:$0xf] %v302_v2  ;;  %s66_s19 = smov 3  ;;  %s360_s20 = smov 127   ;;  %vm280_vm6 = vcmask 31760   ;;  %vm265_vm7 = vcmask 31768  }
   0x5   :  { %17 = vst [vmem:[#allocation0] sm:$0xf] %v16_v3  ;;  %s69_s21 = smov 12  ;;  %s361_s22 = smov 125   ;;  %vm295_vm8 = vcmask 31752  }
   0x6   :  { %s81_s23 = smov 3  ;;  %s84_s24 = smov 12 }
   0x7   :  { %s212_s25 = smov 3  ;;  %s215_s26 = smov 12 }
   0x8   :  { %s362_s27 = smov 123   ;;  %s96_s28 = smov 3 }
   0x9   :  { %s99_s29 = smov 12  ;;  %s363_s30 = smov 126   ;;  %v201_v49 = vld [vmem:[#allocation0 + $0x18] sm:$0x8]  }
   0xa   :  { %s227_s2 = smov 3  ;;  %s230_s3 = smov 12 }
   0xb   :  { %s364_s4 = smov 124   ;;  %s241_s5 = smov 3 }
   0xc   :  { %v23_v4 = vld [vmem:[#allocation0 + $0xb] ss:$-8 sm:%s22_s0]   ;;  %v53_v6 = vld [vmem:[#allocation0 + $0x1] ss:$24 sm:%s52_s15]   ;;  %v38_v10 = vld [vmem:[#allocation0 + $0xa] ss:$-8 sm:%s37_s17]  }
   0xd   :  { %v26_v5 = vld [vmem:[#allocation0 + $0x2b] ss:$-8 sm:%s25_s14]   ;;  %v56_v8 = vld [vmem:[#allocation0 + $0x21] ss:$-8 sm:%s55_s16]   ;;  %v41_v11 = vld [vmem:[#allocation0 + $0x2a] ss:$-8 sm:%s40_s18]  }
   0xe   :  { %v28_v7 = vsel %vm27_vm0, %v26_v5, %v23_v4  ;;  %v58_v9 = vsel %vm27_vm0, %v56_v8, %v53_v6  ;;  %v67_v12 = vld [vmem:[#allocation0] ss:$24 sm:%s66_s19]   ;;  %v82_v14 = vld [vmem:[#allocation0 + $0xb] ss:$-8 sm:%s81_s23]   ;;  %v43_v16 = vsel %vm27_vm0, %v41_v11, %v38_v10  ;;  %v97_v19 = vld [vmem:[#allocation0 + $0xa] ss:$-8 sm:%s96_s28]  }
   0xf   :  { %29 = vrot.lane.b32.xlu0 %v28_v7, %s360_s20  ;;  %59 = vrot.lane.b32.xlu1 %v58_v9, %s361_s22  ;;  %v70_v13 = vld [vmem:[#allocation0 + $0x20] ss:$-8 sm:%s69_s21]   ;;  %v85_v15 = vld [vmem:[#allocation0 + $0x2b] ss:$-8 sm:%s84_s24]   ;;  %s244_s6 = smov 12  ;;  %s365_s7 = smov 122  }
  0x10   :  { %v87_v17 = vsel %vm27_vm0, %v85_v15, %v82_v14  ;;  %v72_v18 = vsel %vm27_vm0, %v70_v13, %v67_v12  ;;  %v100_v20 = vld [vmem:[#allocation0 + $0x2a] ss:$-8 sm:%s99_s29]   ;;  %v228_v23 = vld [vmem:[#allocation0 + $0x9] ss:$-8 sm:%s227_s2]   ;;  %s111_s8 = smov 3  ;;  %s114_s9 = smov 12 }
  0x11   :  { %88 = vrot.lane.b32.xlu2 %v87_v17, %s362_s27  ;;  %v213_v21 = vld [vmem:[#allocation0 + $0xa] ss:$-8 sm:%s212_s25]   ;;  %v231_v24 = vld [vmem:[#allocation0 + $0x29] ss:$-8 sm:%s230_s3]   ;;  %v102_v25 = vsel %vm27_vm0, %v100_v20, %v97_v19  ;;  %s366_s10 = smov 114   ;;  %s125_s11 = smov 3 }
  0x12   :  { %v216_v22 = vld [vmem:[#allocation0 + $0x2a] ss:$-8 sm:%s215_s26]   ;;  %v233_v27 = vsel %vm27_vm0, %v231_v24, %v228_v23  ;;  %s128_s12 = smov 12  ;;  %v242_v28 = vld [vmem:[#allocation0] ss:$24 sm:%s241_s5]   ;;  %s367_s13 = smov 113  }
  0x13   :  { %v218_v26 = vsel %vm27_vm0, %v216_v22, %v213_v21  ;;  %v245_v29 = vld [vmem:[#allocation0 + $0x20] ss:$-8 sm:%s244_s6]   ;;  %v112_v30 = vld [vmem:[#allocation0 + $0x1] ss:$24 sm:%s111_s8]   ;;  %s140_s0 = smov 3  ;;  %s143_s14 = smov 12 }
  0x14   :  { %v115_v31 = vld [vmem:[#allocation0 + $0x21] ss:$-8 sm:%s114_s9]   ;;  %v126_v32 = vld [vmem:[#allocation0] ss:$24 sm:%s125_s11]   ;;  %v247_v34 = vsel %vm27_vm0, %v245_v29, %v242_v28  ;;  %s368_s15 = smov 112   ;;  %s155_s16 = smov 3 }
  0x15   :  { %v129_v33 = vld [vmem:[#allocation0 + $0x20] ss:$-8 sm:%s128_s12]   ;;  %v117_v35 = vsel %vm27_vm0, %v115_v31, %v112_v30  ;;  %s158_s17 = smov 12  ;;  %s369_s18 = smov 121   ;;  %v141_v37 = vld [vmem:[#allocation0 + $0xb] ss:$-8 sm:%s140_s0]  }
  0x16   :  { %v131_v36 = vsel %vm27_vm0, %v129_v33, %v126_v32  ;;  %s170_s19 = smov 3  ;;  %s173_s20 = smov 12  ;;  %v144_v38 = vld [vmem:[#allocation0 + $0x2b] ss:$-8 sm:%s143_s14]   ;;  %v156_v39 = vld [vmem:[#allocation0 + $0xa] ss:$-8 sm:%s155_s16]  }
  0x17   :  { %44 = vrot.lane.b32.xlu0 %v43_v16, %s363_s30  ;;  %73 = vrot.lane.b32.xlu1 %v72_v18, %s364_s4  ;;  %s370_s21 = smov 120   ;;  %v159_v40 = vld [vmem:[#allocation0 + $0x2a] ss:$-8 sm:%s158_s17]   ;;  %v171_v41 = vld [vmem:[#allocation0 + $0x1] ss:$24 sm:%s170_s19]   ;;  %v146_v43 = vsel %vm27_vm0, %v144_v38, %v141_v37  ;;  %s184_s22 = smov 3 }
  0x18   :  { %v174_v42 = vld [vmem:[#allocation0 + $0x21] ss:$-8 sm:%s173_s20]   ;;  %v161_v44 = vsel %vm27_vm0, %v159_v40, %v156_v39  ;;  %s187_s23 = smov 12  ;;  %s371_s24 = smov 119   ;;  %v185_v46 = vld [vmem:[#allocation0] ss:$24 sm:%s184_s22]  }
  0x19   :  { %103 = vrot.lane.b32.xlu2 %v102_v25, %s365_s7  ;;  %v176_v45 = vsel %vm27_vm0, %v174_v42, %v171_v41  ;;  %s372_s25 = smov 118   ;;  %s256_s26 = smov 3  ;;  %v188_v47 = vld [vmem:[#allocation0 + $0x20] ss:$-8 sm:%s187_s23]  }
  0x1a   :  { %s259_s27 = smov 12  ;;  %s373_s28 = smov 117   ;;  %v199_v48 = vld [vmem:[#allocation0 + $0x13] ss:$-8 sm:$0x7]   ;;  %v190_v52 = vsel %vm27_vm0, %v188_v47, %v185_v46 }
  0x1b   :  { %v257_v50 = vld [vmem:[#allocation0 + $0xb] ss:$-8 sm:%s256_s26]   ;;  %v203_v53 = vsel %vm202_vm1, %v201_v49, %v199_v48  ;;  %s271_s29 = smov 3  ;;  %s274_s30 = smov 12 }
  0x1c   :  { %v260_v51 = vld [vmem:[#allocation0 + $0x2b] ss:$-8 sm:%s259_s27]   ;;  %s374_s2 = smov 116   ;;  %s286_s3 = smov 3  ;;  %v272_v55 = vld [vmem:[#allocation0 + $0xa] ss:$-8 sm:%s271_s29]  }
  0x1d   :  { %v262_v54 = vsel %vm27_vm0, %v260_v51, %v257_v50  ;;  %s289_s4 = smov 12  ;;  %s375_s5 = smov 115   ;;  %v275_v56 = vld [vmem:[#allocation0 + $0x2a] ss:$-8 sm:%s274_s30]   ;;  %v287_v57 = vld [vmem:[#allocation0 + $0x1] ss:$24 sm:%s286_s3]  }
  0x1e   :  { %s376_s6 = smov 3   ;;  %v290_v58 = vld [vmem:[#allocation0 + $0x21] ss:$-8 sm:%s289_s4]   ;;  %v277_v59 = vsel %vm27_vm0, %v275_v56, %v272_v55  ;;  %s377_s7 = smov 2  }
  0x1f   :  { %219 = vrot.lane.b32.xlu0 %v218_v26, %s366_s10  ;;  %234 = vrot.lane.b32.xlu1 %v233_v27, %s367_s13  ;;  %v292_v60 = vsel %vm27_vm0, %v290_v58, %v287_v57  ;;  %s378_s8 = smov 1   ;;  %v18_v8 = vld [vmem:[#allocation0] ss:$8 sm:$0xf]  }
  0x20   :  { %20 = vst.msk [vmem:[%s564_s1] ss:$24 sm:$0xf] %vm19_vm2, %v18_v8  }
  0x21   :  { %248 = vrot.lane.b32.xlu2 %v247_v34, %s368_s15 }
  0x27   :  { %118 = vrot.lane.b32.xlu0 %v117_v35, %s369_s18  ;;  %132 = vrot.lane.b32.xlu1 %v131_v36, %s370_s21 }
  0x29   :  { %147 = vrot.lane.b32.xlu2 %v146_v43, %s371_s24 }
  0x2f   :  { %162 = vrot.lane.b32.xlu0 %v161_v44, %s372_s25  ;;  %177 = vrot.lane.b32.xlu1 %v176_v45, %s373_s28 }
  0x31   :  { %191 = vrot.lane.b32.xlu2 %v190_v52, %s374_s2 }
  0x37   :  { %204 = vrot.lane.b32.xlu0 %v203_v53, %s375_s5  ;;  %263 = vrot.lane.b32.xlu1 %v262_v54, %s376_s6 }
  0x39   :  { %278 = vrot.lane.b32.xlu2 %v277_v59, %s377_s7 }
  0x3f   :  { %293 = vrot.lane.b32.xlu0 %v292_v60, %s378_s8 }
  0x6b   :  { %v89_v61 = vpop.permute.xlu2 %88  }
  0x6c   :  { %311 = vst.msk [vmem:[%s564_s1 + $0x26] ss:$-24 sm:$0x3] %vm19_vm2, %v89_v61  }
  0x6d   :  { %312 = vst.msk [vmem:[%s564_s1 + $0x86] ss:$-24 sm:$0xc] %vm19_vm2, %v89_v61  }
  0x73   :  { %v104_v62 = vpop.permute.xlu2 %103  }
  0x74   :  { %313 = vst.msk [vmem:[%s564_s1 + $0x22] ss:$-24 sm:$0x3] %vm19_vm2, %v104_v62  }
  0x75   :  { %314 = vst.msk [vmem:[%s564_s1 + $0x82] ss:$-24 sm:$0xc] %vm19_vm2, %v104_v62  }
  0x7b   :  { %v249_v63 = vpop.permute.xlu2 %248  }
  0x7c   :  { %333 = vst.msk [vmem:[%s564_s1 + $0x4] ss:$72 sm:$0x3] %vm250_vm3, %v249_v63  }
  0x7d   :  { %334 = vst.msk [vmem:[%s564_s1 + $0x64] ss:$-24 sm:$0xc] %vm250_vm3, %v249_v63  }
  0x81   :  { %v30_v0 = vpop.permute.xlu0 %29   ;;  %v60_v1 = vpop.permute.xlu1 %59  }
  0x82   :  { %303 = vst.msk [vmem:[%s564_s1 + $0x25] ss:$-24 sm:$0x3] %vm19_vm2, %v30_v0  }
  0x83   :  { %304 = vst.msk [vmem:[%s564_s1 + $0x85] ss:$-24 sm:$0xc] %vm19_vm2, %v30_v0   ;;  %v148_v2 = vpop.permute.xlu2 %147  }
  0x84   :  { %307 = vst.msk [vmem:[%s564_s1 + $0x5] ss:$72 sm:$0x3] %vm19_vm2, %v60_v1  }
  0x85   :  { %308 = vst.msk [vmem:[%s564_s1 + $0x65] ss:$-24 sm:$0xc] %vm19_vm2, %v60_v1  }
  0x86   :  { %319 = vst.msk [vmem:[%s564_s1 + $0x27] ss:$-24 sm:$0x3] %vm19_vm2, %v148_v2  }
  0x87   :  { %320 = vst.msk [vmem:[%s564_s1 + $0x87] ss:$-24 sm:$0xc] %vm19_vm2, %v148_v2  }
  0x89   :  { %v45_v3 = vpop.permute.xlu0 %44   ;;  %v74_v4 = vpop.permute.xlu1 %73  }
  0x8a   :  { %305 = vst.msk [vmem:[%s564_s1 + $0x21] ss:$-24 sm:$0x3] %vm19_vm2, %v45_v3  }
  0x8b   :  { %306 = vst.msk [vmem:[%s564_s1 + $0x81] ss:$-24 sm:$0xc] %vm19_vm2, %v45_v3   ;;  %v192_v5 = vpop.permute.xlu2 %191  }
  0x8c   :  { %309 = vst.msk [vmem:[%s564_s1 + $0x1] ss:$72 sm:$0x3] %vm19_vm2, %v74_v4  }
  0x8d   :  { %310 = vst.msk [vmem:[%s564_s1 + $0x61] ss:$-24 sm:$0xc] %vm19_vm2, %v74_v4  }
  0x8e   :  { %325 = vst.msk [vmem:[%s564_s1 + $0x3] ss:$72 sm:$0x3] %vm19_vm2, %v192_v5  }
  0x8f   :  { %326 = vst.msk [vmem:[%s564_s1 + $0x63] ss:$-24 sm:$0xc] %vm19_vm2, %v192_v5  }
  0x91   :  { %v220_v6 = vpop.permute.xlu0 %219   ;;  %v235_v7 = vpop.permute.xlu1 %234  }
  0x92   :  { %329 = vst.msk [vmem:[%s564_s1 + $0x24] ss:$-24 sm:$0x3] %vm221_vm4, %v220_v6  }
  0x93   :  { %330 = vst.msk [vmem:[%s564_s1 + $0x84] ss:$-24 sm:$0xc] %vm221_vm4, %v220_v6   ;;  %v279_v9 = vpop.permute.xlu2 %278  }
  0x94   :  { %331 = vst.msk [vmem:[%s564_s1 + $0x20] ss:$-24 sm:$0x3] %vm236_vm5, %v235_v7  }
  0x95   :  { %332 = vst.msk [vmem:[%s564_s1 + $0x80] ss:$-24 sm:$0xc] %vm236_vm5, %v235_v7  }
  0x96   :  { %337 = vst.msk [vmem:[%s564_s1 + $0x20] ss:$-24 sm:$0x3] %vm280_vm6, %v279_v9  }
  0x97   :  { %338 = vst.msk [vmem:[%s564_s1 + $0x80] ss:$-24 sm:$0xc] %vm280_vm6, %v279_v9  }
  0x99   :  { %v119_v10 = vpop.permute.xlu0 %118   ;;  %v133_v11 = vpop.permute.xlu1 %132  }
  0x9a   :  { %315 = vst.msk [vmem:[%s564_s1 + $0x6] ss:$72 sm:$0x3] %vm19_vm2, %v119_v10  }
  0x9b   :  { %316 = vst.msk [vmem:[%s564_s1 + $0x66] ss:$-24 sm:$0xc] %vm19_vm2, %v119_v10  }
  0x9c   :  { %317 = vst.msk [vmem:[%s564_s1 + $0x2] ss:$72 sm:$0x3] %vm19_vm2, %v133_v11  }
  0x9d   :  { %318 = vst.msk [vmem:[%s564_s1 + $0x62] ss:$-24 sm:$0xc] %vm19_vm2, %v133_v11  }
  0xa1   :  { %v163_v12 = vpop.permute.xlu0 %162   ;;  %v178_v13 = vpop.permute.xlu1 %177  }
  0xa2   :  { %321 = vst.msk [vmem:[%s564_s1 + $0x23] ss:$-24 sm:$0x3] %vm19_vm2, %v163_v12  }
  0xa3   :  { %322 = vst.msk [vmem:[%s564_s1 + $0x83] ss:$-24 sm:$0xc] %vm19_vm2, %v163_v12  }
  0xa4   :  { %323 = vst.msk [vmem:[%s564_s1 + $0x7] ss:$72 sm:$0x3] %vm19_vm2, %v178_v13  }
  0xa5   :  { %324 = vst.msk [vmem:[%s564_s1 + $0x67] ss:$-24 sm:$0xc] %vm19_vm2, %v178_v13  }
  0xa9   :  { %v205_v14 = vpop.permute.xlu0 %204   ;;  %v264_v15 = vpop.permute.xlu1 %263  }
  0xaa   :  { %327 = vst.msk [vmem:[%s564_s1 + $0x40] ss:$-24 sm:$0x7] %vm19_vm2, %v205_v14  }
  0xab   :  { %328 = vst.msk [vmem:[%s564_s1 + $0x55] sm:$0x8] %vm19_vm2, %v205_v14  }
  0xac   :  { %335 = vst.msk [vmem:[%s564_s1 + $0x24] ss:$-24 sm:$0x3] %vm265_vm7, %v264_v15  }
  0xad   :  { %336 = vst.msk [vmem:[%s564_s1 + $0x84] ss:$-24 sm:$0xc] %vm265_vm7, %v264_v15  }
  0xb1   :  { %v294_v16 = vpop.permute.xlu0 %293  }
  0xb2   :  { %339 = vst.msk [vmem:[%s564_s1 + $0x4] ss:$72 sm:$0x3] %vm295_vm8, %v294_v16  }
  0xb3   :  { %340 = vst.msk [vmem:[%s564_s1 + $0x64] ss:$-24 sm:$0xc] %vm295_vm8, %v294_v16  }

// kernel: fft_embedding.1
= control target key start
LH: loop header
LB: loop body
LE: loop exit
PB: predicated region body
PF: predicated region fallthrough
CT: control target
= control target key end

     0   :  { %7 = vsyncpa [#allocation3], 0  ;;  %s134_s12 = smov [#allocation2]   ;;  %s135_s14 = smov 256   ;;  %s161_s0 = inlined_call_operand.vmem [shape: f32[8,32], index: 0, kind: input, shape index: {}]   ;;  %s162_s1 = inlined_call_operand.hbm [shape: f32[32,256], index: 1, kind: input, shape index: {}]   ;;  %s163_s2 = inlined_call_operand.vmem [shape: f32[8,128], index: 2, kind: output, shape index: {}]  }
   0x1   :  { %s14_s11 = sshll.u32 %s162_s1, 4  ;;  %s16_s13 = sshll.u32 %s134_s12, 4  ;;  %s15_s11 = int_to_ptr.hbm [resolvable:$true] %s14_s11  ;;  %s17_s13 = int_to_ptr.vmem [resolvable:$true] %s16_s13 }
   0x2   :  { %s136_s15 = smov 16  }
   0x3   :  { %22 = dma.hbm_to_vmem [thread:$0]  %s15_s11, 1024, %s17_s13, [#allocation3], %s135_s14, %s135_s14, %s136_s15  }
   0x4   :  { %132 = dma.done.wait [#allocation3], 1024  }
   0x5   :  { %133 = vsyncadd [#allocation3], 4294966272  ;;  %v34_v0 = vld [vmem:[#allocation2 + $0x30] sm:$0xff]  ;;  %v35_v1 = vld [vmem:[#allocation2 + $0x38] sm:$0xff]  ;;  %vm36_vm0 = vcmask 261120  }
   0x6   :  { %v32_v2 = vld [vmem:[#allocation2 + $0x20] sm:$0xff]  ;;  %52 = vmatpush.msra.mxu0 %v34_v0  ;;  %72 = vmatpush.msra.mxu1 %v35_v1  ;;  %v33_v3 = vld [vmem:[#allocation2 + $0x28] sm:$0xff]  ;;  %v30_v4 = vld [vmem:[#allocation2 + $0x10] sm:$0xff] }
   0x7   :  { %v31_v5 = vld [vmem:[#allocation2 + $0x18] sm:$0xff]  ;;  %v28_v6 = vld [vmem:[#allocation2] sm:$0xff]  ;;  %v29_v7 = vld [vmem:[#allocation2 + $0x8] sm:$0xff] }
   0x8   :  { %53 = vmatpush.msra.mxu0 %v32_v2  ;;  %73 = vmatpush.msra.mxu1 %v33_v3  ;;  %v27_v8 = vld [vmem:[%s161_s0] sm:$0xff] }
   0xa   :  { %54 = vmatpush.msra.mxu0 %v30_v4  ;;  %74 = vmatpush.msra.mxu1 %v31_v5 }
   0xc   :  { %55 = vmatpush.msra.mxu0 %v28_v6  ;;  %75 = vmatpush.msra.mxu1 %v29_v7 }
   0xd   :  { %101 = vmatmul.msk.f32.vlgmr.msra.gmra.mxu0 %vm36_vm0, %v27_v8  ;;  %102 = vmatmul.msk.f32.vlgmr.msra.gmra.mxu1 %vm36_vm0, %v27_v8 }
  0x8a   :  { %v57_v9 = vpop.f32.mrf.mxu0  ;;  %v77_v10 = vpop.f32.mrf.mxu1 }
  0x8b   :  { %v80_v11 = vmul.f32 %v57_v9, %v57_v9  ;;  %v81_v12 = vmul.f32 %v77_v10, %v77_v10 }
  0x8d   :  { %v82_v13 = vadd.f32 %v81_v12, %v80_v11 }
  0x8f   :  { %106 = vrsqrt.f32 %v82_v13  ;;  %vm90_vm1 = vcmp.eq.f32.partialorder %v82_v13, inf  ;;  %v93_v21 = vand.u32 2147483648, %v82_v13  ;;  %vm92_vm2 = vcmp.eq.f32.partialorder %v82_v13, 0.0 }
  0x95   :  { %v107_v14 = vpop.eup %106 }
  0x96   :  { %v84_v15 = vmul.f32 %v107_v14, %v82_v13 }
  0x98   :  { %v85_v16 = vmul.f32 %v107_v14, %v84_v15 }
  0x9a   :  { %v86_v17 = vmul.f32 0.5, %v85_v16 }
  0x9c   :  { %v87_v18 = vsub.f32 1.5, %v86_v17 }
  0x9e   :  { %v88_v19 = vmul.f32 %v107_v14, %v87_v18 }
  0xa0   :  { %v89_v20 = vmul.f32 %v88_v19, %v82_v13 }
  0xa2   :  { %v91_v22 = vsel %vm90_vm1, %v82_v13, %v89_v20 }
  0xa3   :  { %v94_v23 = vsel %vm92_vm2, %v93_v21, %v91_v22 }
  0xa4   :  { %95 = vst [vmem:[%s163_s2] sm:$0xff] %v94_v23 }
  0xa5   :  { %100 = vsyncpa [#allocation3], 1 }

</bundles_post_ra>
